<compile_context>
chip_gen: v6e
topology: v6e:2x2x1
jax: 0.10.0
libtpu: 0.0.40
codegen_flags: <defaults>
</compile_context>

<pallas_src>
import jax
import jax.numpy as jnp
from jax.experimental import pallas as pl
from jax.experimental.pallas import tpu as pltpu

NUM_LAYERS = 6
FEATURES = 16
PACK = 8                      # samples packed per 128-lane row
PACKED_F = PACK * FEATURES    # 128
MAX_TILE_ROWS = 2048          # 2048 * 128 * 4B = 1 MiB per f32 activation tile


def mlp_kernel(x_ref, wt_ref, b_ref, o_ref):
    # x_ref : (tb, 128)      packed activations (8 samples per row), compute dtype
    # wt_ref: (6, 128, 128)  block-diagonal weights (VMEM-resident across grid)
    # b_ref : (6, 1, 128)    packed biases, f32
    # o_ref : (tb, 128)      packed output, f32
    h = x_ref[...]
    acc = None
    for i in range(NUM_LAYERS):                       # static unroll: 6 dense matmuls
        acc = jnp.dot(h, wt_ref[i], preferred_element_type=jnp.float32)
        acc = jnp.maximum(acc + b_ref[i], 0.0)        # bias + ReLU in f32
        h = acc.astype(x_ref.dtype)                   # back to compute dtype
    o_ref[...] = acc.astype(o_ref.dtype)


def pack_params(weights, biases, compute_dtype=jnp.float32):
    """weights: (6,16,16) in PyTorch (out,in) layout; biases: (6,16).
    Call ONCE per parameter set (not per forward call)."""
    wt = jnp.transpose(weights, (0, 2, 1)).astype(jnp.float32)   # (6, in, out)
    eye = jnp.eye(PACK, dtype=jnp.float32)
    # Block-diagonal expansion: 8 copies of Wt on the diagonal -> (6, 128, 128).
    wt_bd = jnp.einsum("pq,lio->lpiqo", eye, wt)
    wt_bd = wt_bd.reshape(NUM_LAYERS, PACKED_F, PACKED_F).astype(compute_dtype)
    b_packed = jnp.tile(biases.astype(jnp.float32), (1, PACK))
    b_packed = b_packed.reshape(NUM_LAYERS, 1, PACKED_F)
    return wt_bd, b_packed


def _pick_tile(rows):
    if rows <= 8:
        return rows                       # full-array block is always legal
    for t in (MAX_TILE_ROWS, 1024, 512, 256, 128, 64, 32, 16, 8):
        if rows % t == 0:
            return t
    return rows                           # fallback: full array


def checkpointed_model_forward(x, wt_bd, b_packed, *, tb=None):
    """x: (B, 16).  wt_bd / b_packed: outputs of pack_params()."""
    B, F = x.shape
    assert F == FEATURES
    compute_dtype = wt_bd.dtype

    # Pad batch to a multiple of PACK so 8 samples pack into one 128-lane row.
    B_pad = ((B + PACK - 1) // PACK) * PACK
    if B_pad != B:
        x = jnp.pad(x, ((0, B_pad - B), (0, 0)))
    rows = B_pad // PACK
    xp = x.reshape(rows, PACKED_F).astype(compute_dtype)

    tb = _pick_tile(rows) if tb is None else tb
    assert rows % tb == 0
    grid = (rows // tb,)

    elem = jnp.dtype(compute_dtype).itemsize
    cost = pl.CostEstimate(
        flops=2 * rows * PACKED_F * PACKED_F * NUM_LAYERS,
        transcendentals=0,
        bytes_accessed=(rows * PACKED_F * elem                      # x in
                        + rows * PACKED_F * 4                       # out (f32)
                        + NUM_LAYERS * PACKED_F * PACKED_F * elem   # weights
                        + NUM_LAYERS * PACKED_F * 4),               # biases
    )

    out = pl.pallas_call(
        mlp_kernel,
        out_shape=jax.ShapeDtypeStruct((rows, PACKED_F), jnp.float32),
        grid_spec=pltpu.PrefetchScalarGridSpec(
            num_scalar_prefetch=0,
            grid=grid,
            in_specs=[
                pl.BlockSpec((tb, PACKED_F), lambda i: (i, 0)),
                # Constant block index -> weights/biases stay VMEM-resident.
                pl.BlockSpec((NUM_LAYERS, PACKED_F, PACKED_F),
                             lambda i: (0, 0, 0)),
                pl.BlockSpec((NUM_LAYERS, 1, PACKED_F),
                             lambda i: (0, 0, 0)),
            ],
            out_specs=pl.BlockSpec((tb, PACKED_F), lambda i: (i, 0)),
        ),
        compiler_params=pltpu.CompilerParams(
            dimension_semantics=("parallel",)),
        cost_estimate=cost,
    )(xp, wt_bd, b_packed)

    return out.reshape(B_pad, FEATURES)[:B].astype(x.dtype)


def reference_forward(x, weights, biases):
    h = x
    for i in range(NUM_LAYERS):
        h = jnp.maximum(h @ weights[i].T + biases[i], 0.0)
    return h


if __name__ == "__main__":
    key = jax.random.PRNGKey(0)
    kx, kw, kb = jax.random.split(key, 3)

    # Deterministic param init mimicking nn.Linear default: U(-1/sqrt(in), 1/sqrt(in))
    bound = 1.0 / jnp.sqrt(jnp.float32(FEATURES))
    weights = jax.random.uniform(
        kw, (NUM_LAYERS, FEATURES, FEATURES),
        minval=-bound, maxval=bound, dtype=jnp.float32)   # (out, in) per layer
    biases = jax.random.uniform(
        kb, (NUM_LAYERS, FEATURES),
        minval=-bound, maxval=bound, dtype=jnp.float32)

    # --- small shape consistent with the module: batch=8, features=16 ---
    B = 8
    x = jax.random.normal(kx, (B, FEATURES), dtype=jnp.float32)
    ref = reference_forward(x, weights, biases)

    # f32 compute path
    wt_f32, b_f32 = pack_params(weights, biases, jnp.float32)
    out = jax.block_until_ready(checkpointed_model_forward(x, wt_f32, b_f32))
    assert out.shape == (B, FEATURES)
    assert jnp.allclose(out, ref, atol=1e-5, rtol=1e-5), "f32 mismatch vs reference"

    # bf16 compute path (HBM-bound speedup, biggest on v5e) -- looser tolerance
    wt_bf16, b_bf16 = pack_params(weights, biases, jnp.bfloat16)
    out_bf16 = jax.block_until_ready(
        checkpointed_model_forward(x, wt_bf16, b_bf16))
    assert jnp.allclose(out_bf16, ref, atol=5e-2, rtol=5e-2), "bf16 mismatch vs reference"

    # Larger batch: exercises a multi-step grid (pipelining + both v7x cores).
    B2 = PACK * MAX_TILE_ROWS * 2          # rows=4096, tb=2048, grid=(2,)
    x2 = jax.random.normal(kx, (B2, FEATURES), dtype=jnp.float32)
    out2 = jax.block_until_ready(checkpointed_model_forward(x2, wt_f32, b_f32))
    ref2 = reference_forward(x2, weights, biases)
    assert jnp.allclose(out2, ref2, atol=1e-4, rtol=1e-4), "tiled mismatch vs reference"

    print("KERNEL_OK")
</pallas_src>

<mosaic_0001>
module attributes {stable_mosaic.version = 11 : i64} {
  func.func @mlp_kernel(%arg0: i32, %arg1: memref<1x128xf32, #tpu.memory_space<vmem>>, %arg2: memref<6x128x128xf32, #tpu.memory_space<vmem>>, %arg3: memref<6x1x128xf32, #tpu.memory_space<vmem>>, %arg4: memref<1x128xf32, #tpu.memory_space<vmem>>) attributes {dimension_semantics = [#tpu.dimension_semantics<parallel>], iteration_bounds = array<i64: 1>, scalar_prefetch = 0 : i64, scratch_operands = 0 : i64, tpu.core_type = #tpu.core_type<tc>, window_params = [{transform_indices = @transform_0, window_bounds = array<i64: 1, 128>}, {pipeline_mode = #tpu.pipeline_mode<synchronous>, transform_indices = @transform_1, window_bounds = array<i64: 6, 128, 128>}, {pipeline_mode = #tpu.pipeline_mode<synchronous>, transform_indices = @transform_2, window_bounds = array<i64: 6, 1, 128>}, {transform_indices = @transform_3, window_bounds = array<i64: 1, 128>}]} {
    %c0 = arith.constant 0 : index
    %c0_0 = arith.constant 0 : index
    %0 = vector.load %arg1[%c0, %c0_0] : memref<1x128xf32, #tpu.memory_space<vmem>>, vector<1x128xf32>
    %c0_1 = arith.constant 0 : index
    %c0_2 = arith.constant 0 : index
    %c0_3 = arith.constant 0 : index
    %1 = vector.load %arg2[%c0_1, %c0_2, %c0_3] : memref<6x128x128xf32, #tpu.memory_space<vmem>>, vector<1x128x128xf32>
    %2 = vector.shape_cast %1 : vector<1x128x128xf32> to vector<128x128xf32>
    %cst = arith.constant dense<0.000000e+00> : vector<1x128xf32>
    %3 = tpu.matmul %0, %2, %cst {dimension_numbers = #tpu.dot_dimension_numbers<[1], [0], [0], [1], [0, 0, 1, 1], [], []>} : vector<1x128xf32>, vector<128x128xf32>, vector<1x128xf32> -> vector<1x128xf32>
    %c0_4 = arith.constant 0 : index
    %c0_5 = arith.constant 0 : index
    %c0_6 = arith.constant 0 : index
    %4 = vector.load %arg3[%c0_4, %c0_5, %c0_6] : memref<6x1x128xf32, #tpu.memory_space<vmem>>, vector<1x1x128xf32>
    %5 = vector.shape_cast %4 : vector<1x1x128xf32> to vector<1x128xf32>
    %6 = arith.addf %3, %5 : vector<1x128xf32>
    %cst_7 = arith.constant 0.000000e+00 : f32
    %7 = vector.broadcast %cst_7 : f32 to vector<1x128xf32>
    %8 = arith.maximumf %6, %7 : vector<1x128xf32>
    %c1 = arith.constant 1 : index
    %c0_8 = arith.constant 0 : index
    %c0_9 = arith.constant 0 : index
    %9 = vector.load %arg2[%c1, %c0_8, %c0_9] : memref<6x128x128xf32, #tpu.memory_space<vmem>>, vector<1x128x128xf32>
    %10 = vector.shape_cast %9 : vector<1x128x128xf32> to vector<128x128xf32>
    %cst_10 = arith.constant dense<0.000000e+00> : vector<1x128xf32>
    %11 = tpu.matmul %8, %10, %cst_10 {dimension_numbers = #tpu.dot_dimension_numbers<[1], [0], [0], [1], [0, 0, 1, 1], [], []>} : vector<1x128xf32>, vector<128x128xf32>, vector<1x128xf32> -> vector<1x128xf32>
    %c1_11 = arith.constant 1 : index
    %c0_12 = arith.constant 0 : index
    %c0_13 = arith.constant 0 : index
    %12 = vector.load %arg3[%c1_11, %c0_12, %c0_13] : memref<6x1x128xf32, #tpu.memory_space<vmem>>, vector<1x1x128xf32>
    %13 = vector.shape_cast %12 : vector<1x1x128xf32> to vector<1x128xf32>
    %14 = arith.addf %11, %13 : vector<1x128xf32>
    %cst_14 = arith.constant 0.000000e+00 : f32
    %15 = vector.broadcast %cst_14 : f32 to vector<1x128xf32>
    %16 = arith.maximumf %14, %15 : vector<1x128xf32>
    %c2 = arith.constant 2 : index
    %c0_15 = arith.constant 0 : index
    %c0_16 = arith.constant 0 : index
    %17 = vector.load %arg2[%c2, %c0_15, %c0_16] : memref<6x128x128xf32, #tpu.memory_space<vmem>>, vector<1x128x128xf32>
    %18 = vector.shape_cast %17 : vector<1x128x128xf32> to vector<128x128xf32>
    %cst_17 = arith.constant dense<0.000000e+00> : vector<1x128xf32>
    %19 = tpu.matmul %16, %18, %cst_17 {dimension_numbers = #tpu.dot_dimension_numbers<[1], [0], [0], [1], [0, 0, 1, 1], [], []>} : vector<1x128xf32>, vector<128x128xf32>, vector<1x128xf32> -> vector<1x128xf32>
    %c2_18 = arith.constant 2 : index
    %c0_19 = arith.constant 0 : index
    %c0_20 = arith.constant 0 : index
    %20 = vector.load %arg3[%c2_18, %c0_19, %c0_20] : memref<6x1x128xf32, #tpu.memory_space<vmem>>, vector<1x1x128xf32>
    %21 = vector.shape_cast %20 : vector<1x1x128xf32> to vector<1x128xf32>
    %22 = arith.addf %19, %21 : vector<1x128xf32>
    %cst_21 = arith.constant 0.000000e+00 : f32
    %23 = vector.broadcast %cst_21 : f32 to vector<1x128xf32>
    %24 = arith.maximumf %22, %23 : vector<1x128xf32>
    %c3 = arith.constant 3 : index
    %c0_22 = arith.constant 0 : index
    %c0_23 = arith.constant 0 : index
    %25 = vector.load %arg2[%c3, %c0_22, %c0_23] : memref<6x128x128xf32, #tpu.memory_space<vmem>>, vector<1x128x128xf32>
    %26 = vector.shape_cast %25 : vector<1x128x128xf32> to vector<128x128xf32>
    %cst_24 = arith.constant dense<0.000000e+00> : vector<1x128xf32>
    %27 = tpu.matmul %24, %26, %cst_24 {dimension_numbers = #tpu.dot_dimension_numbers<[1], [0], [0], [1], [0, 0, 1, 1], [], []>} : vector<1x128xf32>, vector<128x128xf32>, vector<1x128xf32> -> vector<1x128xf32>
    %c3_25 = arith.constant 3 : index
    %c0_26 = arith.constant 0 : index
    %c0_27 = arith.constant 0 : index
    %28 = vector.load %arg3[%c3_25, %c0_26, %c0_27] : memref<6x1x128xf32, #tpu.memory_space<vmem>>, vector<1x1x128xf32>
    %29 = vector.shape_cast %28 : vector<1x1x128xf32> to vector<1x128xf32>
    %30 = arith.addf %27, %29 : vector<1x128xf32>
    %cst_28 = arith.constant 0.000000e+00 : f32
    %31 = vector.broadcast %cst_28 : f32 to vector<1x128xf32>
    %32 = arith.maximumf %30, %31 : vector<1x128xf32>
    %c4 = arith.constant 4 : index
    %c0_29 = arith.constant 0 : index
    %c0_30 = arith.constant 0 : index
    %33 = vector.load %arg2[%c4, %c0_29, %c0_30] : memref<6x128x128xf32, #tpu.memory_space<vmem>>, vector<1x128x128xf32>
    %34 = vector.shape_cast %33 : vector<1x128x128xf32> to vector<128x128xf32>
    %cst_31 = arith.constant dense<0.000000e+00> : vector<1x128xf32>
    %35 = tpu.matmul %32, %34, %cst_31 {dimension_numbers = #tpu.dot_dimension_numbers<[1], [0], [0], [1], [0, 0, 1, 1], [], []>} : vector<1x128xf32>, vector<128x128xf32>, vector<1x128xf32> -> vector<1x128xf32>
    %c4_32 = arith.constant 4 : index
    %c0_33 = arith.constant 0 : index
    %c0_34 = arith.constant 0 : index
    %36 = vector.load %arg3[%c4_32, %c0_33, %c0_34] : memref<6x1x128xf32, #tpu.memory_space<vmem>>, vector<1x1x128xf32>
    %37 = vector.shape_cast %36 : vector<1x1x128xf32> to vector<1x128xf32>
    %38 = arith.addf %35, %37 : vector<1x128xf32>
    %cst_35 = arith.constant 0.000000e+00 : f32
    %39 = vector.broadcast %cst_35 : f32 to vector<1x128xf32>
    %40 = arith.maximumf %38, %39 : vector<1x128xf32>
    %c5 = arith.constant 5 : index
    %c0_36 = arith.constant 0 : index
    %c0_37 = arith.constant 0 : index
    %41 = vector.load %arg2[%c5, %c0_36, %c0_37] : memref<6x128x128xf32, #tpu.memory_space<vmem>>, vector<1x128x128xf32>
    %42 = vector.shape_cast %41 : vector<1x128x128xf32> to vector<128x128xf32>
    %cst_38 = arith.constant dense<0.000000e+00> : vector<1x128xf32>
    %43 = tpu.matmul %40, %42, %cst_38 {dimension_numbers = #tpu.dot_dimension_numbers<[1], [0], [0], [1], [0, 0, 1, 1], [], []>} : vector<1x128xf32>, vector<128x128xf32>, vector<1x128xf32> -> vector<1x128xf32>
    %c5_39 = arith.constant 5 : index
    %c0_40 = arith.constant 0 : index
    %c0_41 = arith.constant 0 : index
    %44 = vector.load %arg3[%c5_39, %c0_40, %c0_41] : memref<6x1x128xf32, #tpu.memory_space<vmem>>, vector<1x1x128xf32>
    %45 = vector.shape_cast %44 : vector<1x1x128xf32> to vector<1x128xf32>
    %46 = arith.addf %43, %45 : vector<1x128xf32>
    %cst_42 = arith.constant 0.000000e+00 : f32
    %47 = vector.broadcast %cst_42 : f32 to vector<1x128xf32>
    %48 = arith.maximumf %46, %47 : vector<1x128xf32>
    %c0_43 = arith.constant 0 : index
    %c0_44 = arith.constant 0 : index
    %49 = vector.load %arg4[%c0_43, %c0_44] : memref<1x128xf32, #tpu.memory_space<vmem>>, vector<1x128xf32>
    tpu.vector_store %arg4[%c0_43, %c0_44], %48 {strides = array<i32>} : memref<1x128xf32, #tpu.memory_space<vmem>>, vector<1x128xf32>,
    return
  }
  func.func @transform_0(%arg0: i32) -> (i32, i32) {
    %c0_i32 = arith.constant 0 : i32
    %c0_i32_0 = arith.constant 0 : i32
    return %arg0, %c0_i32 : i32, i32
  }
  func.func @transform_1(%arg0: i32) -> (i32, i32, i32) {
    %c0_i32 = arith.constant 0 : i32
    %c0_i32_0 = arith.constant 0 : i32
    %c0_i32_1 = arith.constant 0 : i32
    %c0_i32_2 = arith.constant 0 : i32
    return %c0_i32, %c0_i32_0, %c0_i32_1 : i32, i32, i32
  }
  func.func @transform_2(%arg0: i32) -> (i32, i32, i32) {
    %c0_i32 = arith.constant 0 : i32
    %c0_i32_0 = arith.constant 0 : i32
    %c0_i32_1 = arith.constant 0 : i32
    %c0_i32_2 = arith.constant 0 : i32
    return %c0_i32, %c0_i32_0, %c0_i32_1 : i32, i32, i32
  }
  func.func @transform_3(%arg0: i32) -> (i32, i32) {
    %c0_i32 = arith.constant 0 : i32
    %c0_i32_0 = arith.constant 0 : i32
    return %arg0, %c0_i32 : i32, i32
  }
}

</mosaic_0001>

<bundles_post_ra>
// kernel: tpu_custom_call.1
= control target key start
LH: loop header
LB: loop body
LE: loop exit
PB: predicated region body
PF: predicated region fallthrough
CT: control target
= control target key end

     0   :  { %8 = vsyncpa [#allocation3], 0  ;;  %s1168_s0 = inlined_call_operand.hbm [shape: f32[1,128], index: 0, kind: input, shape index: {}]   ;;  %s1169_s1 = inlined_call_operand.hbm [shape: f32[6,128,128], index: 1, kind: input, shape index: {}]   ;;  %s1170_s2 = inlined_call_operand.hbm [shape: f32[6,1,128], index: 2, kind: input, shape index: {}]   ;;  %s1171_s3 = inlined_call_operand.hbm [shape: f32[1,128], index: 3, kind: output, shape index: {}]  }
   0x1   :  { %9 = vsyncpa [#allocation6], 0 }
   0x2   :  { %10 = vsyncpa [#allocation4], 0  ;;  %s1018_s12 = smov [#allocation5]  }
   0x3   :  { %s26_s13 = sshll.u32 %s1018_s12, 4  ;;  %s27_s13 = int_to_ptr.vmem [resolvable:$true] %s26_s13 }
   0x4   :  { %s940_s14 = scalar_lea.vmem %s27_s13, 12288  ;;  %p945_p1 = scmp.lt.s32.totalorder %s27_s13, %s27_s13 }
   0x5   :  { %p941_p0 = scmp.ne.s32.totalorder %s27_s13, %s940_s14  ;;  %p946_p2 = scmp.lt.s32.totalorder %s940_s14, %s940_s14 }
   0x7   :  { %p947_p3 = por %p946_p2, %p945_p1 }
   0x9   :  { %p948_p4 = pnand %p947_p3, %p941_p0 }
   0xb   :  { %951 = shalt.err (!%p948_p4)
}
   0xc   :  { %s1019_s15 = smov 128   ;;  %s1020_s16 = smov 8  }
   0xd   :  { %32 = dma.hbm_to_vmem [thread:$0]  %s1169_s1, 12288, %s27_s13, [#allocation6], %s1019_s15, %s1019_s15, %s1020_s16  }
   0xe   :  { %s1021_s19 = smov [#allocation2]   ;;  %s1022_s21 = smov [#allocation7]  }
   0xf   :  { %s17_s20 = sshll.u32 %s1021_s19, 4  ;;  %s38_s22 = sshll.u32 %s1022_s21, 4  ;;  %s18_s20 = int_to_ptr.vmem [resolvable:$true] %s17_s20  ;;  %s39_s22 = int_to_ptr.vmem [resolvable:$true] %s38_s22 }
  0x10   :  { %s960_s23 = scalar_lea.vmem %s18_s20, 16  ;;  %s964_s24 = scalar_lea.vmem %s18_s20, 32 }
  0x11   :  { %p961_p5 = scmp.ne.s32.totalorder %s18_s20, %s960_s23  ;;  %p965_p6 = scmp.lt.s32.totalorder %s18_s20, %s18_s20 }
  0x12   :  { %p966_p7 = scmp.lt.s32.totalorder %s964_s24, %s960_s23 }
  0x14   :  { %p967_p8 = por %p966_p7, %p965_p6 }
  0x16   :  { %p968_p9 = pnand %p967_p8, %p961_p5 }
  0x18   :  { %971 = shalt.err (!%p968_p9)
}
  0x19   :  { %20 = dma.hbm_to_vmem [thread:$0]  %s1168_s0, 16, %s18_s20, [#allocation3]  }
  0x1a   :  { %s980_s27 = scalar_lea.vmem %s39_s22, 96  ;;  %p985_p11 = scmp.lt.s32.totalorder %s39_s22, %s39_s22 }
  0x1b   :  { %p981_p10 = scmp.ne.s32.totalorder %s39_s22, %s980_s27  ;;  %p986_p12 = scmp.lt.s32.totalorder %s980_s27, %s980_s27 }
  0x1d   :  { %p987_p13 = por %p986_p12, %p985_p11 }
  0x1f   :  { %p988_p0 = pnand %p987_p13, %p981_p10 }
  0x21   :  { %991 = shalt.err (!%p988_p0)
}
  0x22   :  { %s1023_s1 = smov 16   ;;  %s1024_s28 = smov 1  }
  0x23   :  { %44 = dma.hbm_to_vmem [thread:$0]  %s1170_s2, 96, %s39_s22, [#allocation6], %s1023_s1, %s1023_s1, %s1024_s28  }
  0x24   :  { %1012 = dma.done.wait [#allocation3], 16  }
  0x25   :  { %1013 = vsyncadd [#allocation3], 4294967280 }
  0x26   :  { %1014 = dma.done.wait [#allocation6], 12384  }
  0x27   :  { %1015 = vsyncadd [#allocation6], 4294954912  ;;  %v1025_v0 = vmov 0.0   ;;  %vm1026_vm0 = vmmov 0   ;;  %v70_v1 = vld [vmem:[#allocation5 + $0x78] sm:$0xff]  ;;  %v69_v2 = vld [vmem:[#allocation5 + $0x70] sm:$0xff] }
  0x28   :  { %712 = vmatprep.subr.mxu0 %v1025_v0  ;;  %744 = vmatprep.mubr.msk.f32.mxu0 %vm1026_vm0, %v1025_v0  ;;  %v68_v3 = vld [vmem:[#allocation5 + $0x68] sm:$0xff]  ;;  %v67_v4 = vld [vmem:[#allocation5 + $0x60] sm:$0xff]  ;;  %v159_v5 = vld [vmem:[#allocation5 + $0xf8] sm:$0xff]  ;;  %s1027_s0 = smov [#allocation8]  }
  0x29   :  { %747 = vmatprep.subr.mxu1 %v1025_v0  ;;  %779 = vmatprep.mubr.msk.f32.mxu1 %vm1026_vm0, %v1025_v0  ;;  %v66_v6 = vld [vmem:[#allocation5 + $0x58] sm:$0xff]  ;;  %v158_v7 = vld [vmem:[#allocation5 + $0xf0] sm:$0xff]  ;;  %v157_v8 = vld [vmem:[#allocation5 + $0xe8] sm:$0xff]  ;;  %s600_s2 = sshll.u32 %s1027_s0, 4  ;;  %s601_s2 = int_to_ptr.vmem [resolvable:$true] %s600_s2 }
  0x2a   :  { %713 = vmatpush3.msra.mxu0 %v70_v1  ;;  %748 = vmatpush3.msra.mxu1 %v159_v5  ;;  %v65_v9 = vld [vmem:[#allocation5 + $0x50] sm:$0xff]  ;;  %v156_v10 = vld [vmem:[#allocation5 + $0xe0] sm:$0xff]  ;;  %v64_v11 = vld [vmem:[#allocation5 + $0x48] sm:$0xff]  ;;  %s992_s4 = scalar_lea.vmem %s601_s2, 16  ;;  %s996_s5 = scalar_lea.vmem %s601_s2, 32 }
  0x2b   :  { %714 = vmatprep.subr.mxu0 %v1025_v0  ;;  %749 = vmatprep.subr.mxu1 %v1025_v0  ;;  %v155_v12 = vld [vmem:[#allocation5 + $0xd8] sm:$0xff]  ;;  %v63_v13 = vld [vmem:[#allocation5 + $0x40] sm:$0xff]  ;;  %v154_v14 = vld [vmem:[#allocation5 + $0xd0] sm:$0xff]  ;;  %p993_p1 = scmp.ne.s32.totalorder %s601_s2, %s992_s4  ;;  %p997_p2 = scmp.lt.s32.totalorder %s601_s2, %s601_s2 }
  0x2c   :  { %715 = vmatpush3.msra.mxu0 %v69_v2  ;;  %750 = vmatpush3.msra.mxu1 %v158_v7  ;;  %v62_v15 = vld [vmem:[#allocation5 + $0x38] sm:$0xff]  ;;  %v153_v16 = vld [vmem:[#allocation5 + $0xc8] sm:$0xff]  ;;  %v61_v17 = vld [vmem:[#allocation5 + $0x30] sm:$0xff]  ;;  %p998_p3 = scmp.lt.s32.totalorder %s996_s5, %s992_s4 }
  0x2d   :  { %716 = vmatprep.subr.mxu0 %v1025_v0  ;;  %751 = vmatprep.subr.mxu1 %v1025_v0  ;;  %v152_v18 = vld [vmem:[#allocation5 + $0xc0] sm:$0xff]  ;;  %v60_v19 = vld [vmem:[#allocation5 + $0x28] sm:$0xff]  ;;  %v151_v20 = vld [vmem:[#allocation5 + $0xb8] sm:$0xff] }
  0x2e   :  { %717 = vmatpush3.msra.mxu0 %v68_v3  ;;  %752 = vmatpush3.msra.mxu1 %v157_v8  ;;  %v59_v21 = vld [vmem:[#allocation5 + $0x20] sm:$0xff]  ;;  %v150_v22 = vld [vmem:[#allocation5 + $0xb0] sm:$0xff]  ;;  %v58_v23 = vld [vmem:[#allocation5 + $0x18] sm:$0xff]  ;;  %p999_p4 = por %p998_p3, %p997_p2 }
  0x2f   :  { %718 = vmatprep.subr.mxu0 %v1025_v0  ;;  %753 = vmatprep.subr.mxu1 %v1025_v0  ;;  %v149_v24 = vld [vmem:[#allocation5 + $0xa8] sm:$0xff]  ;;  %v57_v25 = vld [vmem:[#allocation5 + $0x10] sm:$0xff]  ;;  %v148_v26 = vld [vmem:[#allocation5 + $0xa0] sm:$0xff] }
  0x30   :  { %719 = vmatpush3.msra.mxu0 %v67_v4  ;;  %754 = vmatpush3.msra.mxu1 %v156_v10  ;;  %v56_v27 = vld [vmem:[#allocation5 + $0x8] sm:$0xff]  ;;  %v147_v28 = vld [vmem:[#allocation5 + $0x98] sm:$0xff]  ;;  %v55_v29 = vld [vmem:[#allocation5] sm:$0xff]  ;;  %p1000_p5 = pnand %p999_p4, %p993_p1 }
  0x31   :  { %720 = vmatprep.subr.mxu0 %v1025_v0  ;;  %755 = vmatprep.subr.mxu1 %v1025_v0  ;;  %v54_v30 = vld [vmem:[#allocation2] sm:$0x1]  ;;  %v146_v31 = vld [vmem:[#allocation5 + $0x90] sm:$0xff]  ;;  %v145_v32 = vld [vmem:[#allocation5 + $0x88] sm:$0xff] }
  0x32   :  { %721 = vmatpush3.msra.mxu0 %v66_v6  ;;  %756 = vmatpush3.msra.mxu1 %v155_v12  ;;  %v144_v33 = vld [vmem:[#allocation5 + $0x80] sm:$0xff]  ;;  %v249_v34 = vld [vmem:[#allocation5 + $0x178] sm:$0xff]  ;;  %v248_v35 = vld [vmem:[#allocation5 + $0x170] sm:$0xff] }
  0x33   :  { %722 = vmatprep.subr.mxu0 %v1025_v0  ;;  %757 = vmatprep.subr.mxu1 %v1025_v0  ;;  %v247_v36 = vld [vmem:[#allocation5 + $0x168] sm:$0xff]  ;;  %v246_v37 = vld [vmem:[#allocation5 + $0x160] sm:$0xff]  ;;  %v245_v38 = vld [vmem:[#allocation5 + $0x158] sm:$0xff] }
  0x34   :  { %723 = vmatpush3.msra.mxu0 %v65_v9  ;;  %758 = vmatpush3.msra.mxu1 %v154_v14  ;;  %v244_v39 = vld [vmem:[#allocation5 + $0x150] sm:$0xff]  ;;  %v243_v40 = vld [vmem:[#allocation5 + $0x148] sm:$0xff]  ;;  %v242_v41 = vld [vmem:[#allocation5 + $0x140] sm:$0xff] }
  0x35   :  { %724 = vmatprep.subr.mxu0 %v1025_v0  ;;  %759 = vmatprep.subr.mxu1 %v1025_v0  ;;  %v241_v42 = vld [vmem:[#allocation5 + $0x138] sm:$0xff]  ;;  %v240_v43 = vld [vmem:[#allocation5 + $0x130] sm:$0xff]  ;;  %v239_v44 = vld [vmem:[#allocation5 + $0x128] sm:$0xff] }
  0x36   :  { %725 = vmatpush3.msra.mxu0 %v64_v11  ;;  %760 = vmatpush3.msra.mxu1 %v153_v16  ;;  %v238_v45 = vld [vmem:[#allocation5 + $0x120] sm:$0xff]  ;;  %v237_v46 = vld [vmem:[#allocation5 + $0x118] sm:$0xff]  ;;  %v236_v52 = vld [vmem:[#allocation5 + $0x110] sm:$0xff] }
  0x37   :  { %726 = vmatprep.subr.mxu0 %v1025_v0  ;;  %761 = vmatprep.subr.mxu1 %v1025_v0  ;;  %v71_v47 = vld [vmem:[#allocation7] sm:$0x1]  ;;  %v235_v53 = vld [vmem:[#allocation5 + $0x108] sm:$0xff]  ;;  %v339_v55 = vld [vmem:[#allocation5 + $0x1f8] sm:$0xff] }
  0x38   :  { %727 = vmatpush3.msra.mxu0 %v63_v13  ;;  %762 = vmatpush3.msra.mxu1 %v152_v18  ;;  %v234_v54 = vld [vmem:[#allocation5 + $0x100] sm:$0xff]  ;;  %v338_v56 = vld [vmem:[#allocation5 + $0x1f0] sm:$0xff]  ;;  %v337_v57 = vld [vmem:[#allocation5 + $0x1e8] sm:$0xff] }
  0x39   :  { %728 = vmatprep.subr.mxu0 %v1025_v0  ;;  %763 = vmatprep.subr.mxu1 %v1025_v0  ;;  %v336_v58 = vld [vmem:[#allocation5 + $0x1e0] sm:$0xff]  ;;  %v335_v59 = vld [vmem:[#allocation5 + $0x1d8] sm:$0xff]  ;;  %v334_v60 = vld [vmem:[#allocation5 + $0x1d0] sm:$0xff] }
  0x3a   :  { %729 = vmatpush3.msra.mxu0 %v62_v15  ;;  %764 = vmatpush3.msra.mxu1 %v151_v20  ;;  %v333_v61 = vld [vmem:[#allocation5 + $0x1c8] sm:$0xff]  ;;  %v332_v62 = vld [vmem:[#allocation5 + $0x1c0] sm:$0xff]  ;;  %v331_v63 = vld [vmem:[#allocation5 + $0x1b8] sm:$0xff] }
  0x3b   :  { %730 = vmatprep.subr.mxu0 %v1025_v0  ;;  %765 = vmatprep.subr.mxu1 %v1025_v0  ;;  %v330_v1 = vld [vmem:[#allocation5 + $0x1b0] sm:$0xff]  ;;  %v329_v2 = vld [vmem:[#allocation5 + $0x1a8] sm:$0xff]  ;;  %v328_v3 = vld [vmem:[#allocation5 + $0x1a0] sm:$0xff] }
  0x3c   :  { %731 = vmatpush3.msra.mxu0 %v61_v17  ;;  %766 = vmatpush3.msra.mxu1 %v150_v22  ;;  %v327_v4 = vld [vmem:[#allocation5 + $0x198] sm:$0xff]  ;;  %v161_v5 = vld [vmem:[#allocation7 + $0x1] sm:$0x1]  ;;  %v326_v10 = vld [vmem:[#allocation5 + $0x190] sm:$0xff] }
  0x3d   :  { %732 = vmatprep.subr.mxu0 %v1025_v0  ;;  %767 = vmatprep.subr.mxu1 %v1025_v0  ;;  %v325_v11 = vld [vmem:[#allocation5 + $0x188] sm:$0xff]  ;;  %v324_v12 = vld [vmem:[#allocation5 + $0x180] sm:$0xff]  ;;  %v429_v13 = vld [vmem:[#allocation5 + $0x278] sm:$0xff] }
  0x3e   :  { %733 = vmatpush3.msra.mxu0 %v60_v19  ;;  %768 = vmatpush3.msra.mxu1 %v149_v24  ;;  %v428_v14 = vld [vmem:[#allocation5 + $0x270] sm:$0xff]  ;;  %v427_v15 = vld [vmem:[#allocation5 + $0x268] sm:$0xff]  ;;  %v426_v16 = vld [vmem:[#allocation5 + $0x260] sm:$0xff] }
  0x3f   :  { %734 = vmatprep.subr.mxu0 %v1025_v0  ;;  %769 = vmatprep.subr.mxu1 %v1025_v0  ;;  %v425_v17 = vld [vmem:[#allocation5 + $0x258] sm:$0xff]  ;;  %v424_v18 = vld [vmem:[#allocation5 + $0x250] sm:$0xff]  ;;  %v423_v19 = vld [vmem:[#allocation5 + $0x248] sm:$0xff] }
  0x40   :  { %735 = vmatpush3.msra.mxu0 %v59_v21  ;;  %770 = vmatpush3.msra.mxu1 %v148_v26  ;;  %v422_v20 = vld [vmem:[#allocation5 + $0x240] sm:$0xff]  ;;  %v421_v21 = vld [vmem:[#allocation5 + $0x238] sm:$0xff]  ;;  %v420_v22 = vld [vmem:[#allocation5 + $0x230] sm:$0xff] }
  0x41   :  { %736 = vmatprep.subr.mxu0 %v1025_v0  ;;  %771 = vmatprep.subr.mxu1 %v1025_v0  ;;  %v418_v24 = vld [vmem:[#allocation5 + $0x220] sm:$0xff] }
  0x42   :  { %737 = vmatpush3.msra.mxu0 %v58_v23  ;;  %772 = vmatpush3.msra.mxu1 %v147_v28  ;;  %v419_v23 = vld [vmem:[#allocation5 + $0x228] sm:$0xff]  ;;  %v251_v26 = vld [vmem:[#allocation7 + $0x2] sm:$0x1] }
  0x43   :  { %738 = vmatprep.subr.mxu0 %v1025_v0  ;;  %773 = vmatprep.subr.mxu1 %v1025_v0 }
  0x44   :  { %739 = vmatpush3.msra.mxu0 %v57_v25  ;;  %774 = vmatpush3.msra.mxu1 %v146_v31  ;;  %v417_v25 = vld [vmem:[#allocation5 + $0x218] sm:$0xff]  ;;  %v416_v31 = vld [vmem:[#allocation5 + $0x210] sm:$0xff] }
  0x45   :  { %740 = vmatprep.subr.mxu0 %v1025_v0  ;;  %775 = vmatprep.subr.mxu1 %v1025_v0 }
  0x46   :  { %741 = vmatpush3.msra.mxu0 %v56_v27  ;;  %776 = vmatpush3.msra.mxu1 %v145_v32  ;;  %v415_v32 = vld [vmem:[#allocation5 + $0x208] sm:$0xff] }
  0x47   :  { %742 = vmatprep.subr.mxu0 %v1025_v0  ;;  %777 = vmatprep.subr.mxu1 %v1025_v0 }
  0x48   :  { %743 = vmatpush3.msra.mxu0 %v55_v29  ;;  %778 = vmatpush3.msra.mxu1 %v144_v33  ;;  %v414_v33 = vld [vmem:[#allocation5 + $0x200] sm:$0xff] }
  0x49   :  { %745 = vmatmul.mubr.f32.vlgmr.msra.gmra.mxu0 %v54_v30  ;;  %782 = vmatprep.subr.mxu0 %v1025_v0 }
  0x4a   :  { %814 = vmatprep.mubr.msk.f32.mxu0 %vm1026_vm0, %v1025_v0  ;;  %817 = vmatprep.subr.mxu1 %v1025_v0 }
  0x4b   :  { %783 = vmatpush3.msra.mxu0 %v249_v34  ;;  %v519_v34 = vld [vmem:[#allocation5 + $0x2f8] sm:$0xff] }
  0x4c   :  { %784 = vmatprep.subr.mxu0 %v1025_v0 }
  0x4d   :  { %785 = vmatpush3.msra.mxu0 %v248_v35  ;;  %v518_v35 = vld [vmem:[#allocation5 + $0x2f0] sm:$0xff] }
  0x4e   :  { %786 = vmatprep.subr.mxu0 %v1025_v0 }
  0x4f   :  { %787 = vmatpush3.msra.mxu0 %v247_v36  ;;  %v517_v36 = vld [vmem:[#allocation5 + $0x2e8] sm:$0xff] }
  0x50   :  { %788 = vmatprep.subr.mxu0 %v1025_v0 }
  0x51   :  { %789 = vmatpush3.msra.mxu0 %v246_v37  ;;  %v516_v37 = vld [vmem:[#allocation5 + $0x2e0] sm:$0xff] }
  0x52   :  { %790 = vmatprep.subr.mxu0 %v1025_v0 }
  0x53   :  { %791 = vmatpush3.msra.mxu0 %v245_v38  ;;  %v515_v38 = vld [vmem:[#allocation5 + $0x2d8] sm:$0xff] }
  0x54   :  { %792 = vmatprep.subr.mxu0 %v1025_v0 }
  0x55   :  { %793 = vmatpush3.msra.mxu0 %v244_v39  ;;  %v514_v39 = vld [vmem:[#allocation5 + $0x2d0] sm:$0xff] }
  0x56   :  { %794 = vmatprep.subr.mxu0 %v1025_v0 }
  0x57   :  { %795 = vmatpush3.msra.mxu0 %v243_v40  ;;  %v513_v40 = vld [vmem:[#allocation5 + $0x2c8] sm:$0xff] }
  0x58   :  { %796 = vmatprep.subr.mxu0 %v1025_v0 }
  0x59   :  { %797 = vmatpush3.msra.mxu0 %v242_v41  ;;  %v512_v41 = vld [vmem:[#allocation5 + $0x2c0] sm:$0xff] }
  0x5a   :  { %798 = vmatprep.subr.mxu0 %v1025_v0 }
  0x5b   :  { %799 = vmatpush3.msra.mxu0 %v241_v42  ;;  %v511_v42 = vld [vmem:[#allocation5 + $0x2b8] sm:$0xff] }
  0x5c   :  { %800 = vmatprep.subr.mxu0 %v1025_v0 }
  0x5d   :  { %801 = vmatpush3.msra.mxu0 %v240_v43  ;;  %v510_v43 = vld [vmem:[#allocation5 + $0x2b0] sm:$0xff] }
  0x5e   :  { %802 = vmatprep.subr.mxu0 %v1025_v0 }
  0x5f   :  { %803 = vmatpush3.msra.mxu0 %v239_v44  ;;  %v509_v44 = vld [vmem:[#allocation5 + $0x2a8] sm:$0xff] }
  0x60   :  { %804 = vmatprep.subr.mxu0 %v1025_v0 }
  0x61   :  { %805 = vmatpush3.msra.mxu0 %v238_v45  ;;  %v508_v45 = vld [vmem:[#allocation5 + $0x2a0] sm:$0xff] }
  0x62   :  { %806 = vmatprep.subr.mxu0 %v1025_v0 }
  0x63   :  { %807 = vmatpush3.msra.mxu0 %v237_v46  ;;  %v507_v46 = vld [vmem:[#allocation5 + $0x298] sm:$0xff] }
  0x64   :  { %808 = vmatprep.subr.mxu0 %v1025_v0 }
  0x65   :  { %809 = vmatpush3.msra.mxu0 %v236_v52  ;;  %v506_v52 = vld [vmem:[#allocation5 + $0x290] sm:$0xff] }
  0x66   :  { %810 = vmatprep.subr.mxu0 %v1025_v0 }
  0x67   :  { %811 = vmatpush3.msra.mxu0 %v235_v53  ;;  %v505_v53 = vld [vmem:[#allocation5 + $0x288] sm:$0xff] }
  0x68   :  { %812 = vmatprep.subr.mxu0 %v1025_v0 }
  0x69   :  { %813 = vmatpush3.msra.mxu0 %v234_v54  ;;  %v504_v54 = vld [vmem:[#allocation5 + $0x280] sm:$0xff] }
  0x6a   :  { %852 = vmatprep.subr.mxu0 %v1025_v0 }
 0x109   :  { %v138_v48 = vpop.f32.mrf.mxu0 }
 0x10a   :  { %v139_v49 = vadd.f32 %v138_v48, %v71_v47  ;;  %v341_v47 = vld [vmem:[#allocation7 + $0x3] sm:$0x1] }
 0x10b   :  { %v746_v50 = vpop.f32.mrf.mxu0 }
 0x10c   :  { %v142_v51 = vmax.f32 %v139_v49, 0.0 }
 0x10e   :  { %780 = vmatmul.mubr.f32.vlgmr.msra.gmra.mxu1 %v142_v51 }
 0x10f   :  { %849 = vmatprep.mubr.msk.f32.mxu1 %vm1026_vm0, %v1025_v0  ;;  %818 = vmatpush3.msra.mxu1 %v339_v55  ;;  %v431_v55 = vld [vmem:[#allocation7 + $0x4] sm:$0x1] }
 0x110   :  { %819 = vmatprep.subr.mxu1 %v1025_v0 }
 0x111   :  { %820 = vmatpush3.msra.mxu1 %v338_v56 }
 0x112   :  { %821 = vmatprep.subr.mxu1 %v1025_v0 }
 0x113   :  { %822 = vmatpush3.msra.mxu1 %v337_v57 }
 0x114   :  { %823 = vmatprep.subr.mxu1 %v1025_v0 }
 0x115   :  { %824 = vmatpush3.msra.mxu1 %v336_v58 }
 0x116   :  { %825 = vmatprep.subr.mxu1 %v1025_v0 }
 0x117   :  { %826 = vmatpush3.msra.mxu1 %v335_v59 }
 0x118   :  { %827 = vmatprep.subr.mxu1 %v1025_v0 }
 0x119   :  { %828 = vmatpush3.msra.mxu1 %v334_v60  ;;  %v521_v60 = vld [vmem:[#allocation7 + $0x5] sm:$0x1] }
 0x11a   :  { %829 = vmatprep.subr.mxu1 %v1025_v0 }
 0x11b   :  { %830 = vmatpush3.msra.mxu1 %v333_v61 }
 0x11c   :  { %831 = vmatprep.subr.mxu1 %v1025_v0 }
 0x11d   :  { %832 = vmatpush3.msra.mxu1 %v332_v62 }
 0x11e   :  { %833 = vmatprep.subr.mxu1 %v1025_v0 }
 0x11f   :  { %834 = vmatpush3.msra.mxu1 %v331_v63 }
 0x120   :  { %835 = vmatprep.subr.mxu1 %v1025_v0 }
 0x121   :  { %836 = vmatpush3.msra.mxu1 %v330_v1 }
 0x122   :  { %837 = vmatprep.subr.mxu1 %v1025_v0 }
 0x123   :  { %838 = vmatpush3.msra.mxu1 %v329_v2 }
 0x124   :  { %839 = vmatprep.subr.mxu1 %v1025_v0 }
 0x125   :  { %840 = vmatpush3.msra.mxu1 %v328_v3 }
 0x126   :  { %841 = vmatprep.subr.mxu1 %v1025_v0 }
 0x127   :  { %842 = vmatpush3.msra.mxu1 %v327_v4 }
 0x128   :  { %843 = vmatprep.subr.mxu1 %v1025_v0 }
 0x129   :  { %844 = vmatpush3.msra.mxu1 %v326_v10 }
 0x12a   :  { %845 = vmatprep.subr.mxu1 %v1025_v0 }
 0x12b   :  { %846 = vmatpush3.msra.mxu1 %v325_v11 }
 0x12c   :  { %847 = vmatprep.subr.mxu1 %v1025_v0 }
 0x12d   :  { %848 = vmatpush3.msra.mxu1 %v324_v12 }
 0x12e   :  { %887 = vmatprep.subr.mxu1 %v1025_v0 }
 0x1ce   :  { %v228_v6 = vpop.f32.mrf.mxu1 }
 0x1cf   :  { %v229_v7 = vadd.f32 %v228_v6, %v161_v5 }
 0x1d0   :  { %v781_v8 = vpop.f32.mrf.mxu1 }
 0x1d1   :  { %v232_v9 = vmax.f32 %v229_v7, 0.0 }
 0x1d3   :  { %815 = vmatmul.mubr.f32.vlgmr.msra.gmra.mxu0 %v232_v9 }
 0x1d4   :  { %884 = vmatprep.mubr.msk.f32.mxu0 %vm1026_vm0, %v1025_v0  ;;  %853 = vmatpush3.msra.mxu0 %v429_v13 }
 0x1d5   :  { %854 = vmatprep.subr.mxu0 %v1025_v0 }
 0x1d6   :  { %855 = vmatpush3.msra.mxu0 %v428_v14 }
 0x1d7   :  { %856 = vmatprep.subr.mxu0 %v1025_v0 }
 0x1d8   :  { %857 = vmatpush3.msra.mxu0 %v427_v15 }
 0x1d9   :  { %858 = vmatprep.subr.mxu0 %v1025_v0 }
 0x1da   :  { %859 = vmatpush3.msra.mxu0 %v426_v16 }
 0x1db   :  { %860 = vmatprep.subr.mxu0 %v1025_v0 }
 0x1dc   :  { %861 = vmatpush3.msra.mxu0 %v425_v17 }
 0x1dd   :  { %862 = vmatprep.subr.mxu0 %v1025_v0 }
 0x1de   :  { %863 = vmatpush3.msra.mxu0 %v424_v18 }
 0x1df   :  { %864 = vmatprep.subr.mxu0 %v1025_v0 }
 0x1e0   :  { %865 = vmatpush3.msra.mxu0 %v423_v19 }
 0x1e1   :  { %866 = vmatprep.subr.mxu0 %v1025_v0 }
 0x1e2   :  { %867 = vmatpush3.msra.mxu0 %v422_v20 }
 0x1e3   :  { %868 = vmatprep.subr.mxu0 %v1025_v0 }
 0x1e4   :  { %869 = vmatpush3.msra.mxu0 %v421_v21 }
 0x1e5   :  { %870 = vmatprep.subr.mxu0 %v1025_v0 }
 0x1e6   :  { %871 = vmatpush3.msra.mxu0 %v420_v22 }
 0x1e7   :  { %872 = vmatprep.subr.mxu0 %v1025_v0 }
 0x1e8   :  { %873 = vmatpush3.msra.mxu0 %v419_v23 }
 0x1e9   :  { %874 = vmatprep.subr.mxu0 %v1025_v0 }
 0x1ea   :  { %875 = vmatpush3.msra.mxu0 %v418_v24 }
 0x1eb   :  { %876 = vmatprep.subr.mxu0 %v1025_v0 }
 0x1ec   :  { %877 = vmatpush3.msra.mxu0 %v417_v25 }
 0x1ed   :  { %878 = vmatprep.subr.mxu0 %v1025_v0 }
 0x1ee   :  { %879 = vmatpush3.msra.mxu0 %v416_v31 }
 0x1ef   :  { %880 = vmatprep.subr.mxu0 %v1025_v0 }
 0x1f0   :  { %881 = vmatpush3.msra.mxu0 %v415_v32 }
 0x1f1   :  { %882 = vmatprep.subr.mxu0 %v1025_v0 }
 0x1f2   :  { %883 = vmatpush3.msra.mxu0 %v414_v33 }
 0x293   :  { %v318_v27 = vpop.f32.mrf.mxu0 }
 0x294   :  { %v319_v28 = vadd.f32 %v318_v27, %v251_v26 }
 0x295   :  { %v816_v29 = vpop.f32.mrf.mxu0 }
 0x296   :  { %v322_v30 = vmax.f32 %v319_v28, 0.0 }
 0x298   :  { %850 = vmatmul.mubr.f32.vlgmr.msra.gmra.mxu1 %v322_v30 }
 0x299   :  { %919 = vmatprep.mubr.msk.f32.mxu1 %vm1026_vm0, %v1025_v0  ;;  %888 = vmatpush3.msra.mxu1 %v519_v34 }
 0x29a   :  { %889 = vmatprep.subr.mxu1 %v1025_v0 }
 0x29b   :  { %890 = vmatpush3.msra.mxu1 %v518_v35 }
 0x29c   :  { %891 = vmatprep.subr.mxu1 %v1025_v0 }
 0x29d   :  { %892 = vmatpush3.msra.mxu1 %v517_v36 }
 0x29e   :  { %893 = vmatprep.subr.mxu1 %v1025_v0 }
 0x29f   :  { %894 = vmatpush3.msra.mxu1 %v516_v37 }
 0x2a0   :  { %895 = vmatprep.subr.mxu1 %v1025_v0 }
 0x2a1   :  { %896 = vmatpush3.msra.mxu1 %v515_v38 }
 0x2a2   :  { %897 = vmatprep.subr.mxu1 %v1025_v0 }
 0x2a3   :  { %898 = vmatpush3.msra.mxu1 %v514_v39 }
 0x2a4   :  { %899 = vmatprep.subr.mxu1 %v1025_v0 }
 0x2a5   :  { %900 = vmatpush3.msra.mxu1 %v513_v40 }
 0x2a6   :  { %901 = vmatprep.subr.mxu1 %v1025_v0 }
 0x2a7   :  { %902 = vmatpush3.msra.mxu1 %v512_v41 }
 0x2a8   :  { %903 = vmatprep.subr.mxu1 %v1025_v0 }
 0x2a9   :  { %904 = vmatpush3.msra.mxu1 %v511_v42 }
 0x2aa   :  { %905 = vmatprep.subr.mxu1 %v1025_v0 }
 0x2ab   :  { %906 = vmatpush3.msra.mxu1 %v510_v43 }
 0x2ac   :  { %907 = vmatprep.subr.mxu1 %v1025_v0 }
 0x2ad   :  { %908 = vmatpush3.msra.mxu1 %v509_v44 }
 0x2ae   :  { %909 = vmatprep.subr.mxu1 %v1025_v0 }
 0x2af   :  { %910 = vmatpush3.msra.mxu1 %v508_v45 }
 0x2b0   :  { %911 = vmatprep.subr.mxu1 %v1025_v0 }
 0x2b1   :  { %912 = vmatpush3.msra.mxu1 %v507_v46 }
 0x2b2   :  { %913 = vmatprep.subr.mxu1 %v1025_v0 }
 0x2b3   :  { %914 = vmatpush3.msra.mxu1 %v506_v52 }
 0x2b4   :  { %915 = vmatprep.subr.mxu1 %v1025_v0 }
 0x2b5   :  { %916 = vmatpush3.msra.mxu1 %v505_v53 }
 0x2b6   :  { %917 = vmatprep.subr.mxu1 %v1025_v0 }
 0x2b7   :  { %918 = vmatpush3.msra.mxu1 %v504_v54 }
 0x358   :  { %v408_v48 = vpop.f32.mrf.mxu1 }
 0x359   :  { %v409_v49 = vadd.f32 %v408_v48, %v341_v47 }
 0x35a   :  { %v851_v50 = vpop.f32.mrf.mxu1 }
 0x35b   :  { %v412_v51 = vmax.f32 %v409_v49, 0.0 }
 0x35d   :  { %885 = vmatmul.mubr.f32.vlgmr.msra.gmra.mxu0 %v412_v51 }
 0x41d   :  { %v498_v56 = vpop.f32.mrf.mxu0 }
 0x41e   :  { %v499_v57 = vadd.f32 %v498_v56, %v431_v55 }
 0x41f   :  { %v886_v58 = vpop.f32.mrf.mxu0 }
 0x420   :  { %v502_v59 = vmax.f32 %v499_v57, 0.0 }
 0x422   :  { %920 = vmatmul.mubr.f32.vlgmr.msra.gmra.mxu1 %v502_v59 }
 0x4e2   :  { %v588_v61 = vpop.f32.mrf.mxu1 }
 0x4e3   :  { %v589_v62 = vadd.f32 %v588_v61, %v521_v60 }
 0x4e4   :  { %v921_v63 = vpop.f32.mrf.mxu1 }
 0x4e5   :  { %v592_v1 = vmax.f32 %v589_v62, 0.0 }
 0x4e7   :  { %593 = vst [vmem:[#allocation8] sm:$0x1] %v592_v1 }
 0x4e8   :  { %1003 = shalt.err (!%p1000_p5)
}
 0x4e9   :  { %603 = dma.vmem_to_hbm [thread:$0]  %s601_s2, 16, %s1171_s3, [#allocation4]  }
 0x4ea   :  { %1016 = dma.done.wait [#allocation4], 16  }
 0x4eb   :  { %1017 = vsyncadd [#allocation4], 4294967280 }
 0x4ec   :  { %607 = vsyncpa [#allocation3], 1 }
 0x4ed   :  { %608 = vsyncpa [#allocation6], 1 }
 0x4ee   :  { %609 = vsyncpa [#allocation4], 1 }

</bundles_post_ra>
